<compile_context>
chip_gen: v7x
topology: tpu7x:2x2x1
jax: 0.10.0
libtpu: 0.0.40
codegen_flags: <defaults>
</compile_context>

<pallas_src>
import functools

import jax
import jax.numpy as jnp
from jax.experimental import pallas as pl
from jax.experimental.pallas import tpu as pltpu


def _round_up(n, m):
    return ((n + m - 1) // m) * m


def _dqn_kernel(x_ref, w1_ref, b1_ref, w2_ref, b2_ref, w3_ref, b3_ref, o_ref,
                *, obs_dim, l1_mxu):
    # ---- Layer 1: Linear(obs_dim -> 128) + ReLU -----------------------------
    if l1_mxu:
        # Big batch tile: single MXU pass (x padded to K=8 in the wrapper,
        # w1 rows >= obs_dim are zero).  Keeps (tb,128) intermediates in VMEM
        # instead of blowing the vreg file with 4 full-tile broadcast FMAs.
        h1 = jnp.dot(x_ref[...], w1_ref[...],
                     preferred_element_type=jnp.float32) + b1_ref[...]
    else:
        # Small batch tile (latency path): K=4 is too small for an MXU round
        # trip -- unroll as VPU broadcast multiply-adds on resident vregs.
        h1 = x_ref[:, 0:1] * w1_ref[0:1, :] + b1_ref[...]        # (tb, 128)
        for k in range(1, obs_dim):                               # static unroll
            h1 = h1 + x_ref[:, k:k + 1] * w1_ref[k:k + 1, :]
    h1 = jnp.maximum(h1, 0.0)

    # ---- Layer 2: Linear(128 -> 128) + ReLU, MXU (bf16 weights, f32 acc) ----
    h2 = jnp.dot(h1.astype(w2_ref.dtype), w2_ref[...],
                 preferred_element_type=jnp.float32)
    h2 = jnp.maximum(h2 + b2_ref[...], 0.0)

    # ---- Layer 3: Linear(128 -> A), no activation (Q-values) ----------------
    q = jnp.dot(h2.astype(w3_ref.dtype), w3_ref[...],
                preferred_element_type=jnp.float32) + b3_ref[...]   # (tb, 128)
    # o_ref's last dim is either the 128-lane padded slab (small B, unmasked
    # full stores) or the narrow true action count (large B, 64x fewer HBM bytes).
    o_ref[...] = q[:, :o_ref.shape[1]].astype(o_ref.dtype)


@functools.partial(jax.jit, static_argnames=("num_actions", "batch_tile"))
def dqn_forward(x, prepared, *, num_actions, batch_tile=512):
    """x: (B, obs_dim) f32.  prepared: dict from prepare_dqn_params()."""
    w1, b1, w2, b2, w3, b3 = (prepared[k] for k in ("w1", "b1", "w2", "b2", "w3", "b3"))
    B, obs_dim = x.shape
    hidden = w2.shape[0]
    a_pad = w3.shape[1]          # lane-padded action dim (multiple of 128)
    kp = w1.shape[0]             # sublane-padded obs dim (multiple of 8)

    # Batch tiling: ragged last tile handled by Pallas (masked boundary I/O),
    # so no zero+scatter of x in the wrapper.  B > batch_tile => >=2 grid steps
    # (sharded across v7x's 2 TensorCores via "parallel").
    tb = min(_round_up(max(B, 1), 8), batch_tile)
    grid = (pl.cdiv(B, tb),)

    # Layer-1 implementation choice (static): MXU for big tiles, VPU for small.
    l1_mxu = tb > 128
    if l1_mxu and obs_dim != kp:
        # Tiny per-call pad of the K dim (4 -> 8); only on the large-batch path
        # where it is negligible next to the batch stream.
        x_in = jnp.pad(x, ((0, 0), (0, kp - obs_dim)))
        x_block = (tb, kp)
    else:
        x_in = x
        x_block = (tb, obs_dim if not l1_mxu else kp)

    # Output mode: lane-dense 128-wide slab for small B, narrow for large B.
    wide_out = B < 1024
    out_w = a_pad if wide_out else num_actions

    # Weights/biases: constant block index across the batch grid -> loaded to
    # VMEM once and kept resident for every batch tile (no re-DMA per step).
    def _resident(a):
        return pl.BlockSpec(a.shape, lambda i: (0, 0))

    kernel = functools.partial(_dqn_kernel, obs_dim=obs_dim, l1_mxu=l1_mxu)

    flops = 2 * B * (obs_dim * hidden + hidden * hidden + hidden * num_actions)
    bytes_accessed = (
        x_in.size * x_in.dtype.itemsize
        + B * out_w * 4
        + sum(a.size * a.dtype.itemsize for a in (w1, b1, w2, b2, w3, b3))
    )

    out = pl.pallas_call(
        kernel,
        out_shape=jax.ShapeDtypeStruct((B, out_w), jnp.float32),
        grid=grid,
        in_specs=[
            pl.BlockSpec(x_block, lambda i: (i, 0)),   # x: batch-tiled
            _resident(w1), _resident(b1),
            _resident(w2), _resident(b2),
            _resident(w3), _resident(b3),
        ],
        out_specs=pl.BlockSpec((tb, out_w), lambda i: (i, 0)),
        compiler_params=pltpu.CompilerParams(
            dimension_semantics=("parallel",),
        ),
        cost_estimate=pl.CostEstimate(
            flops=flops, transcendentals=0, bytes_accessed=bytes_accessed),
    )(x_in, w1, b1, w2, b2, w3, b3)

    # Strip lane padding (wide path only); batch dim is already exact.
    return out[:, :num_actions] if wide_out else out


def prepare_dqn_params(params):
    """One-time (outside the per-call path) kernel-layout preparation:
    - w1 sublane-padded to a multiple of 8 rows (f32; tiny, shared by VPU/MXU paths)
    - w2, w3 cast to bf16 (MXU default precision truncates to bf16 anyway)
    - w3/b3 lane-padded to a multiple of 128 for lane-dense output.
    """
    w1, b1, w2, b2, w3, b3 = (params[k] for k in ("w1", "b1", "w2", "b2", "w3", "b3"))
    obs_dim, hidden = w1.shape
    num_actions = w3.shape[1]

    kp = _round_up(obs_dim, 8)
    a_pad = _round_up(num_actions, 128)

    w1p = jnp.zeros((kp, hidden), jnp.float32).at[:obs_dim].set(w1)
    w3p = jnp.zeros((hidden, a_pad), jnp.float32).at[:, :num_actions].set(w3)
    b3p = jnp.zeros((1, a_pad), jnp.float32).at[:, :num_actions].set(b3)

    return {
        "w1": w1p,                       # (kp, 128) f32
        "b1": b1.astype(jnp.float32),    # (1, 128)  f32
        "w2": w2.astype(jnp.bfloat16),   # (128, 128) bf16
        "b2": b2.astype(jnp.float32),    # (1, 128)  f32
        "w3": w3p.astype(jnp.bfloat16),  # (128, a_pad) bf16
        "b3": b3p,                       # (1, a_pad) f32
    }


def init_dqn_params(key, obs_dim, num_actions, hidden=128):
    """Deterministic init mimicking PyTorch nn.Linear default (U(-1/sqrt(fan_in), +))."""
    keys = jax.random.split(key, 6)

    def linear(kw, kb, fan_in, fan_out):
        bound = 1.0 / jnp.sqrt(jnp.float32(fan_in))
        w = jax.random.uniform(kw, (fan_in, fan_out), jnp.float32, -bound, bound)
        b = jax.random.uniform(kb, (1, fan_out), jnp.float32, -bound, bound)
        return w, b

    w1, b1 = linear(keys[0], keys[1], obs_dim, hidden)
    w2, b2 = linear(keys[2], keys[3], hidden, hidden)
    w3, b3 = linear(keys[4], keys[5], hidden, num_actions)
    return {"w1": w1, "b1": b1, "w2": w2, "b2": b2, "w3": w3, "b3": b3}


def dqn_forward_ref(x, p):
    """True-math f32 reference (HIGHEST precision dots)."""
    P = jax.lax.Precision.HIGHEST
    h1 = jnp.maximum(jnp.dot(x, p["w1"], precision=P) + p["b1"], 0.0)
    h2 = jnp.maximum(jnp.dot(h1, p["w2"], precision=P) + p["b2"], 0.0)
    return jnp.dot(h2, p["w3"], precision=P) + p["b3"]


if __name__ == "__main__":
    # CartPole-like shapes: observation dim 4, 2 actions.
    OBS_DIM, NUM_ACTIONS = 4, 2
    # bf16 matmul weights -> compare against the f32 reference with a bf16-level tolerance.
    TOL = dict(atol=2e-2, rtol=2e-2)

    key = jax.random.PRNGKey(0)
    k_params, k_x = jax.random.split(key)
    raw_params = init_dqn_params(k_params, OBS_DIM, NUM_ACTIONS)
    params = prepare_dqn_params(raw_params)   # one-time layout prep (hoisted out of forward)

    # 1) Small batch (act()-style): VPU layer-1 path, lane-dense padded output.
    x = jax.random.normal(k_x, (2, OBS_DIM), dtype=jnp.float32)
    q = jax.block_until_ready(dqn_forward(x, params, num_actions=NUM_ACTIONS))
    assert q.shape == (2, NUM_ACTIONS)
    assert jnp.allclose(q, dqn_forward_ref(x, raw_params), **TOL), "small-batch mismatch"

    # 2) Ragged mid batch: MXU layer-1 path (tb > 128), single grid step, wide output.
    xb = jax.random.normal(jax.random.PRNGKey(1), (300, OBS_DIM), dtype=jnp.float32)
    qb = jax.block_until_ready(dqn_forward(xb, params, num_actions=NUM_ACTIONS))
    assert qb.shape == (300, NUM_ACTIONS)
    assert jnp.allclose(qb, dqn_forward_ref(xb, raw_params), **TOL), "mid-batch mismatch"

    # 3) Large batch: multi-step "parallel" grid (v7x dual-TC), MXU layer-1, narrow output.
    xl = jax.random.normal(jax.random.PRNGKey(2), (2048, OBS_DIM), dtype=jnp.float32)
    ql = jax.block_until_ready(dqn_forward(xl, params, num_actions=NUM_ACTIONS))
    assert ql.shape == (2048, NUM_ACTIONS)
    assert jnp.allclose(ql, dqn_forward_ref(xl, raw_params), **TOL), "large-batch mismatch"

    print("KERNEL_OK")
</pallas_src>

<mosaic_0001>
module attributes {stable_mosaic.version = 11 : i64} {
  func.func @_dqn_kernel(%arg0: i32, %arg1: memref<8x4xf32, #tpu.memory_space<vmem>>, %arg2: memref<8x128xf32, #tpu.memory_space<vmem>>, %arg3: memref<1x128xf32, #tpu.memory_space<vmem>>, %arg4: memref<128x128xbf16, #tpu.memory_space<vmem>>, %arg5: memref<1x128xf32, #tpu.memory_space<vmem>>, %arg6: memref<128x128xbf16, #tpu.memory_space<vmem>>, %arg7: memref<1x128xf32, #tpu.memory_space<vmem>>, %arg8: memref<8x128xf32, #tpu.memory_space<vmem>>) attributes {dimension_semantics = [#tpu.dimension_semantics<parallel>], iteration_bounds = array<i64: 1>, scalar_prefetch = 0 : i64, scratch_operands = 0 : i64, tpu.core_type = #tpu.core_type<tc>, window_params = [{transform_indices = @transform_0, window_bounds = array<i64: 8, 4>}, {pipeline_mode = #tpu.pipeline_mode<synchronous>, transform_indices = @transform_1, window_bounds = array<i64: 8, 128>}, {pipeline_mode = #tpu.pipeline_mode<synchronous>, transform_indices = @transform_2, window_bounds = array<i64: 1, 128>}, {pipeline_mode = #tpu.pipeline_mode<synchronous>, transform_indices = @transform_3, window_bounds = array<i64: 128, 128>}, {pipeline_mode = #tpu.pipeline_mode<synchronous>, transform_indices = @transform_4, window_bounds = array<i64: 1, 128>}, {pipeline_mode = #tpu.pipeline_mode<synchronous>, transform_indices = @transform_5, window_bounds = array<i64: 128, 128>}, {pipeline_mode = #tpu.pipeline_mode<synchronous>, transform_indices = @transform_6, window_bounds = array<i64: 1, 128>}, {transform_indices = @transform_7, window_bounds = array<i64: 8, 128>}]} {
    %c0 = arith.constant 0 : index
    %c0_0 = arith.constant 0 : index
    %0 = vector.load %arg1[%c0, %c0_0] : memref<8x4xf32, #tpu.memory_space<vmem>>, vector<8x1xf32>
    %c0_1 = arith.constant 0 : index
    %c0_2 = arith.constant 0 : index
    %1 = vector.load %arg2[%c0_1, %c0_2] : memref<8x128xf32, #tpu.memory_space<vmem>>, vector<1x128xf32>
    %2 = vector.broadcast %0 : vector<8x1xf32> to vector<8x128xf32>
    %3 = vector.broadcast %1 : vector<1x128xf32> to vector<8x128xf32>
    %4 = arith.mulf %2, %3 : vector<8x128xf32>
    %c0_3 = arith.constant 0 : index
    %c0_4 = arith.constant 0 : index
    %5 = vector.load %arg3[%c0_3, %c0_4] : memref<1x128xf32, #tpu.memory_space<vmem>>, vector<1x128xf32>
    %6 = vector.broadcast %5 : vector<1x128xf32> to vector<8x128xf32>
    %7 = arith.addf %4, %6 : vector<8x128xf32>
    %c0_5 = arith.constant 0 : index
    %c1 = arith.constant 1 : index
    %8 = vector.load %arg1[%c0_5, %c1] : memref<8x4xf32, #tpu.memory_space<vmem>>, vector<8x1xf32>
    %c1_6 = arith.constant 1 : index
    %c0_7 = arith.constant 0 : index
    %9 = vector.load %arg2[%c1_6, %c0_7] : memref<8x128xf32, #tpu.memory_space<vmem>>, vector<1x128xf32>
    %10 = vector.broadcast %8 : vector<8x1xf32> to vector<8x128xf32>
    %11 = vector.broadcast %9 : vector<1x128xf32> to vector<8x128xf32>
    %12 = arith.mulf %10, %11 : vector<8x128xf32>
    %13 = arith.addf %7, %12 : vector<8x128xf32>
    %c0_8 = arith.constant 0 : index
    %c2 = arith.constant 2 : index
    %14 = vector.load %arg1[%c0_8, %c2] : memref<8x4xf32, #tpu.memory_space<vmem>>, vector<8x1xf32>
    %c2_9 = arith.constant 2 : index
    %c0_10 = arith.constant 0 : index
    %15 = vector.load %arg2[%c2_9, %c0_10] : memref<8x128xf32, #tpu.memory_space<vmem>>, vector<1x128xf32>
    %16 = vector.broadcast %14 : vector<8x1xf32> to vector<8x128xf32>
    %17 = vector.broadcast %15 : vector<1x128xf32> to vector<8x128xf32>
    %18 = arith.mulf %16, %17 : vector<8x128xf32>
    %19 = arith.addf %13, %18 : vector<8x128xf32>
    %c0_11 = arith.constant 0 : index
    %c3 = arith.constant 3 : index
    %20 = vector.load %arg1[%c0_11, %c3] : memref<8x4xf32, #tpu.memory_space<vmem>>, vector<8x1xf32>
    %c3_12 = arith.constant 3 : index
    %c0_13 = arith.constant 0 : index
    %21 = vector.load %arg2[%c3_12, %c0_13] : memref<8x128xf32, #tpu.memory_space<vmem>>, vector<1x128xf32>
    %22 = vector.broadcast %20 : vector<8x1xf32> to vector<8x128xf32>
    %23 = vector.broadcast %21 : vector<1x128xf32> to vector<8x128xf32>
    %24 = arith.mulf %22, %23 : vector<8x128xf32>
    %25 = arith.addf %19, %24 : vector<8x128xf32>
    %cst = arith.constant 0.000000e+00 : f32
    %26 = vector.broadcast %cst : f32 to vector<8x128xf32>
    %27 = arith.maximumf %25, %26 : vector<8x128xf32>
    %28 = arith.truncf %27 : vector<8x128xf32> to vector<8x128xbf16>
    %c0_14 = arith.constant 0 : index
    %c0_15 = arith.constant 0 : index
    %29 = vector.load %arg4[%c0_14, %c0_15] : memref<128x128xbf16, #tpu.memory_space<vmem>>, vector<128x128xbf16>
    %cst_16 = arith.constant dense<0.000000e+00> : vector<8x128xf32>
    %30 = tpu.matmul %28, %29, %cst_16 {dimension_numbers = #tpu.dot_dimension_numbers<[1], [0], [0], [1], [0, 0, 1, 1], [], []>} : vector<8x128xbf16>, vector<128x128xbf16>, vector<8x128xf32> -> vector<8x128xf32>
    %c0_17 = arith.constant 0 : index
    %c0_18 = arith.constant 0 : index
    %31 = vector.load %arg5[%c0_17, %c0_18] : memref<1x128xf32, #tpu.memory_space<vmem>>, vector<1x128xf32>
    %32 = vector.broadcast %31 : vector<1x128xf32> to vector<8x128xf32>
    %33 = arith.addf %30, %32 : vector<8x128xf32>
    %cst_19 = arith.constant 0.000000e+00 : f32
    %34 = vector.broadcast %cst_19 : f32 to vector<8x128xf32>
    %35 = arith.maximumf %33, %34 : vector<8x128xf32>
    %36 = arith.truncf %35 : vector<8x128xf32> to vector<8x128xbf16>
    %c0_20 = arith.constant 0 : index
    %c0_21 = arith.constant 0 : index
    %37 = vector.load %arg6[%c0_20, %c0_21] : memref<128x128xbf16, #tpu.memory_space<vmem>>, vector<128x128xbf16>
    %cst_22 = arith.constant dense<0.000000e+00> : vector<8x128xf32>
    %38 = tpu.matmul %36, %37, %cst_22 {dimension_numbers = #tpu.dot_dimension_numbers<[1], [0], [0], [1], [0, 0, 1, 1], [], []>} : vector<8x128xbf16>, vector<128x128xbf16>, vector<8x128xf32> -> vector<8x128xf32>
    %c0_23 = arith.constant 0 : index
    %c0_24 = arith.constant 0 : index
    %39 = vector.load %arg7[%c0_23, %c0_24] : memref<1x128xf32, #tpu.memory_space<vmem>>, vector<1x128xf32>
    %40 = vector.broadcast %39 : vector<1x128xf32> to vector<8x128xf32>
    %41 = arith.addf %38, %40 : vector<8x128xf32>
    %c0_25 = arith.constant 0 : index
    %c0_26 = arith.constant 0 : index
    %42 = vector.load %arg8[%c0_25, %c0_26] : memref<8x128xf32, #tpu.memory_space<vmem>>, vector<8x128xf32>
    tpu.vector_store %arg8[%c0_25, %c0_26], %41 {strides = array<i32>} : memref<8x128xf32, #tpu.memory_space<vmem>>, vector<8x128xf32>,
    return
  }
  func.func @transform_0(%arg0: i32) -> (i32, i32) {
    %c0_i32 = arith.constant 0 : i32
    %c0_i32_0 = arith.constant 0 : i32
    return %arg0, %c0_i32 : i32, i32
  }
  func.func @transform_1(%arg0: i32) -> (i32, i32) {
    %c0_i32 = arith.constant 0 : i32
    %c0_i32_0 = arith.constant 0 : i32
    %c0_i32_1 = arith.constant 0 : i32
    return %c0_i32, %c0_i32_0 : i32, i32
  }
  func.func @transform_2(%arg0: i32) -> (i32, i32) {
    %c0_i32 = arith.constant 0 : i32
    %c0_i32_0 = arith.constant 0 : i32
    %c0_i32_1 = arith.constant 0 : i32
    return %c0_i32, %c0_i32_0 : i32, i32
  }
  func.func @transform_3(%arg0: i32) -> (i32, i32) {
    %c0_i32 = arith.constant 0 : i32
    %c0_i32_0 = arith.constant 0 : i32
    %c0_i32_1 = arith.constant 0 : i32
    return %c0_i32, %c0_i32_0 : i32, i32
  }
  func.func @transform_4(%arg0: i32) -> (i32, i32) {
    %c0_i32 = arith.constant 0 : i32
    %c0_i32_0 = arith.constant 0 : i32
    %c0_i32_1 = arith.constant 0 : i32
    return %c0_i32, %c0_i32_0 : i32, i32
  }
  func.func @transform_5(%arg0: i32) -> (i32, i32) {
    %c0_i32 = arith.constant 0 : i32
    %c0_i32_0 = arith.constant 0 : i32
    %c0_i32_1 = arith.constant 0 : i32
    return %c0_i32, %c0_i32_0 : i32, i32
  }
  func.func @transform_6(%arg0: i32) -> (i32, i32) {
    %c0_i32 = arith.constant 0 : i32
    %c0_i32_0 = arith.constant 0 : i32
    %c0_i32_1 = arith.constant 0 : i32
    return %c0_i32, %c0_i32_0 : i32, i32
  }
  func.func @transform_7(%arg0: i32) -> (i32, i32) {
    %c0_i32 = arith.constant 0 : i32
    %c0_i32_0 = arith.constant 0 : i32
    return %arg0, %c0_i32 : i32, i32
  }
}

</mosaic_0001>

<bundles_post_ra>
// kernel: dqn_forward.1
= control target key start
LH: loop header
LB: loop body
LE: loop exit
PB: predicated region body
PF: predicated region fallthrough
CT: control target
= control target key end

     0   :  { %12 = vsyncpa [#allocation3], 0  ;;  %s730_s0 = inlined_call_operand.hbm [shape: f32[2,4], index: 0, kind: input, shape index: {}]   ;;  %s731_s1 = inlined_call_operand.vmem [shape: f32[8,128], index: 1, kind: input, shape index: {}]   ;;  %s732_s2 = inlined_call_operand.vmem [shape: f32[1,128], index: 2, kind: input, shape index: {}]   ;;  %s733_s3 = inlined_call_operand.hbm [shape: bf16[128,128], index: 3, kind: input, shape index: {}]   ;;  %s734_s4 = inlined_call_operand.vmem [shape: f32[1,128], index: 4, kind: input, shape index: {}]   ;;  %s735_s5 = inlined_call_operand.hbm [shape: bf16[128,128], index: 5, kind: input, shape index: {}]   ;;  %s736_s6 = inlined_call_operand.vmem [shape: f32[1,128], index: 6, kind: input, shape index: {}]   ;;  %s737_s7 = inlined_call_operand.hbm [shape: f32[2,128], index: 7, kind: output, shape index: {}]  }
   0x1   :  { %13 = vsyncpa [#allocation6], 0 }
   0x2   :  { %14 = vsyncpa [#allocation4], 0 }
   0x3   :  { %19 = vsyncadd [#allocation3], 96  ;;  %s577_s24 = smov [#allocation5]   ;;  %s483_s28 = scalar_lea.hbm %s733_s3, 1024 }
   0x4   :  { %s36_s25 = sshll.u32 %s577_s24, 4  ;;  %p484_p0 = scmp.ne.s32.totalorder %s733_s3, %s483_s28  ;;  %s37_s25 = int_to_ptr.vmem [resolvable:$true] %s36_s25 }
   0x5   :  { %p487_p1 = scmp.lt.u32.totalorder %s483_s28, %s733_s3 }
   0x7   :  { %p489_p2 = pnand %p487_p1, %p484_p0 }
   0x9   :  { %492 = shalt.err (!%p489_p2)
}
   0xa   :  { %s493_s10 = scalar_lea.vmem %s37_s25, 1024  ;;  %p498_p4 = scmp.lt.s32.totalorder %s37_s25, %s37_s25 }
   0xb   :  { %p494_p3 = scmp.ne.s32.totalorder %s37_s25, %s493_s10  ;;  %p499_p5 = scmp.lt.s32.totalorder %s493_s10, %s493_s10 }
   0xd   :  { %p500_p6 = por %p499_p5, %p498_p4 }
   0xf   :  { %p501_p7 = pnand %p500_p6, %p494_p3 }
  0x11   :  { %504 = shalt.err (!%p501_p7)
}
  0x12   :  { %s578_s11 = smov 64   ;;  %s579_s12 = smov 4  }
  0x13   :  { %42 = dma.hbm_to_vmem [thread:$0]  %s733_s3, 1024, %s37_s25, [#allocation6], %s578_s11, %s578_s11, %s579_s12  }
  0x14   :  { %s580_s15 = smov [#allocation2]   ;;  %s505_s19 = scalar_lea.hbm %s730_s0, 32 }
  0x15   :  { %s20_s16 = sshll.u32 %s580_s15, 4  ;;  %p506_p8 = scmp.ne.s32.totalorder %s730_s0, %s505_s19  ;;  %s21_s16 = int_to_ptr.vmem [resolvable:$true] %s20_s16 }
  0x16   :  { %p509_p9 = scmp.lt.u32.totalorder %s505_s19, %s730_s0 }
  0x18   :  { %p511_p10 = pnand %p509_p9, %p506_p8 }
  0x1a   :  { %514 = shalt.err (!%p511_p10)
}
  0x1b   :  { %s515_s24 = scalar_lea.vmem %s21_s16, 32  ;;  %s519_s3 = scalar_lea.vmem %s21_s16, 128 }
  0x1c   :  { %p516_p11 = scmp.ne.s32.totalorder %s21_s16, %s515_s24  ;;  %p520_p12 = scmp.lt.s32.totalorder %s21_s16, %s21_s16 }
  0x1d   :  { %p521_p13 = scmp.lt.s32.totalorder %s519_s3, %s515_s24 }
  0x1f   :  { %p522_p0 = por %p521_p13, %p520_p12 }
  0x21   :  { %p523_p1 = pnand %p522_p0, %p516_p11 }
  0x23   :  { %526 = shalt.err (!%p523_p1)
}
  0x24   :  { %s581_s25 = smov 32   ;;  %s582_s26 = smov 2  }
  0x25   :  { %26 = dma.hbm_to_vmem [thread:$0]  %s730_s0, 32, %s21_s16, [#allocation3], %s581_s25, %s581_s25, %s582_s26  }
  0x26   :  { %s583_s29 = smov [#allocation7]   ;;  %s527_s10 = scalar_lea.hbm %s735_s5, 1024 }
  0x27   :  { %s50_s30 = sshll.u32 %s583_s29, 4  ;;  %p528_p2 = scmp.ne.s32.totalorder %s735_s5, %s527_s10  ;;  %s51_s30 = int_to_ptr.vmem [resolvable:$true] %s50_s30 }
  0x28   :  { %p531_p3 = scmp.lt.u32.totalorder %s527_s10, %s735_s5 }
  0x2a   :  { %p533_p4 = pnand %p531_p3, %p528_p2 }
  0x2c   :  { %536 = shalt.err (!%p533_p4)
}
  0x2d   :  { %s537_s18 = scalar_lea.vmem %s51_s30, 1024  ;;  %p542_p6 = scmp.lt.s32.totalorder %s51_s30, %s51_s30 }
  0x2e   :  { %p538_p5 = scmp.ne.s32.totalorder %s51_s30, %s537_s18  ;;  %p543_p7 = scmp.lt.s32.totalorder %s537_s18, %s537_s18 }
  0x30   :  { %p544_p8 = por %p543_p7, %p542_p6 }
  0x32   :  { %p545_p9 = pnand %p544_p8, %p538_p5 }
  0x34   :  { %548 = shalt.err (!%p545_p9)
}
  0x35   :  { %56 = dma.hbm_to_vmem [thread:$0]  %s735_s5, 1024, %s51_s30, [#allocation6], %s578_s11, %s578_s11, %s579_s12  }
  0x36   :  { %571 = dma.done.wait [#allocation3], 128  }
  0x37   :  { %572 = vsyncadd [#allocation3], 4294967168 }
  0x38   :  { %573 = dma.done.wait [#allocation6], 2048  }
  0x39   :  { %574 = vsyncadd [#allocation6], 4294965248  ;;  %v584_v0 = vmov 0   ;;  %v585_v1 = vmov 2   ;;  %v586_v2 = vmov 0.0   ;;  %v69_v3 = vld [vmem:[#allocation2] sm:$0xff] }
  0x3a   :  { %462 = vset.pattern.permute.xlu0 %v584_v0  ;;  %464 = vset.pattern.permute.xlu1 %v585_v1  ;;  %v467_v4 = vld [vmem:[#allocation5] sm:$0xff]   ;;  %v468_v5 = vld [vmem:[#allocation5 + $0x8] sm:$0xff]   ;;  %v587_v6 = vmov 1   ;;  %v588_v7 = vmov 3   ;;  %v469_v8 = vld [vmem:[#allocation5 + $0x10] sm:$0xff]   ;;  %vm589_vm0 = vmmov 0  }
  0x3b   :  { %408 = vmatprep.subr.bf16.mxu0 %v586_v2  ;;  %428 = vmatprep.subr.bf16.mxu1 %v586_v2  ;;  %v470_v9 = vld [vmem:[#allocation5 + $0x18] sm:$0xff]   ;;  %v471_v10 = vld [vmem:[#allocation5 + $0x20] sm:$0xff]   ;;  %v472_v12 = vld [vmem:[#allocation5 + $0x28] sm:$0xff]  }
  0x3c   :  { %73 = vperm.xlu0 %462, %v69_v3   ;;  %102 = vperm.xlu1 %464, %v69_v3   ;;  %v475_v11 = vld [vmem:[#allocation7] sm:$0xff]   ;;  %v476_v13 = vld [vmem:[#allocation7 + $0x8] sm:$0xff]   ;;  %v473_v14 = vld [vmem:[#allocation5 + $0x30] sm:$0xff]  }
  0x3d   :  { %409 = vmatpush3.bf16.msra.mxu0 %v467_v4  ;;  %424 = vmatprep.mubr.msk.bf16.mxu0 %vm589_vm0, %v586_v2  ;;  %v477_v15 = vld [vmem:[#allocation7 + $0x10] sm:$0xff]   ;;  %v474_v16 = vld [vmem:[#allocation5 + $0x38] sm:$0xff]   ;;  %v479_v18 = vld [vmem:[#allocation7 + $0x20] sm:$0xff]  }
  0x3e   :  { %410 = vmatprep.subr.bf16.mxu0 %v586_v2  ;;  %444 = vmatprep.mubr.msk.bf16.mxu1 %vm589_vm0, %v586_v2  ;;  %v478_v17 = vld [vmem:[#allocation7 + $0x18] sm:$0xff]   ;;  %v480_v19 = vld [vmem:[#allocation7 + $0x28] sm:$0xff]   ;;  %v367_v20 = vld [vmem:[%s731_s1] ss:$0 sm:$0xff] }
  0x3f   :  { %429 = vmatpush3.bf16.msra.mxu1 %v475_v11  ;;  %v368_v24 = vld [vmem:[%s732_s2] ss:$0 sm:$0xff]  ;;  %v369_v25 = vld [vmem:[%s731_s1 + $0x1] ss:$0 sm:$0xff]  ;;  %v370_v26 = vld [vmem:[%s731_s1 + $0x2] ss:$0 sm:$0xff] }
  0x40   :  { %463 = vset.pattern.permute.xlu0 %v587_v6  ;;  %465 = vset.pattern.permute.xlu1 %v588_v7  ;;  %v371_v28 = vld [vmem:[%s731_s1 + $0x3] ss:$0 sm:$0xff]  ;;  %v482_v40 = vld [vmem:[#allocation7 + $0x38] sm:$0xff]   ;;  %v372_v41 = vld [vmem:[%s734_s4] ss:$0 sm:$0xff] }
  0x41   :  { %91 = vperm.xlu0 %463, %v69_v3   ;;  %113 = vperm.xlu1 %465, %v69_v3   ;;  %v481_v39 = vld [vmem:[#allocation7 + $0x30] sm:$0xff]  }
  0x42   :  { %411 = vmatpush3.bf16.msra.mxu0 %v468_v5  ;;  %430 = vmatprep.subr.bf16.mxu1 %v586_v2  ;;  %v381_v49 = vld [vmem:[%s736_s6] ss:$0 sm:$0xff] }
  0x43   :  { %412 = vmatprep.subr.bf16.mxu0 %v586_v2  ;;  %431 = vmatpush3.bf16.msra.mxu1 %v476_v13 }
  0x44   :  { %432 = vmatprep.subr.bf16.mxu1 %v586_v2 }
  0x45   :  { %466 = vset.pattern.permute.xlu0 %v588_v7 }
  0x46   :  { %413 = vmatpush3.bf16.msra.mxu0 %v469_v8 }
  0x47   :  { %414 = vmatprep.subr.bf16.mxu0 %v586_v2  ;;  %433 = vmatpush3.bf16.msra.mxu1 %v477_v15 }
  0x48   :  { %434 = vmatprep.subr.bf16.mxu1 %v586_v2 }
  0x4a   :  { %415 = vmatpush3.bf16.msra.mxu0 %v470_v9 }
  0x4b   :  { %416 = vmatprep.subr.bf16.mxu0 %v586_v2  ;;  %435 = vmatpush3.bf16.msra.mxu1 %v478_v17 }
  0x4c   :  { %436 = vmatprep.subr.bf16.mxu1 %v586_v2 }
  0x4e   :  { %417 = vmatpush3.bf16.msra.mxu0 %v471_v10 }
  0x4f   :  { %418 = vmatprep.subr.bf16.mxu0 %v586_v2  ;;  %437 = vmatpush3.bf16.msra.mxu1 %v479_v18 }
  0x50   :  { %438 = vmatprep.subr.bf16.mxu1 %v586_v2 }
  0x52   :  { %419 = vmatpush3.bf16.msra.mxu0 %v472_v12 }
  0x53   :  { %420 = vmatprep.subr.bf16.mxu0 %v586_v2  ;;  %439 = vmatpush3.bf16.msra.mxu1 %v480_v19 }
  0x54   :  { %440 = vmatprep.subr.bf16.mxu1 %v586_v2 }
  0x56   :  { %421 = vmatpush3.bf16.msra.mxu0 %v473_v14 }
  0x57   :  { %422 = vmatprep.subr.bf16.mxu0 %v586_v2  ;;  %441 = vmatpush3.bf16.msra.mxu1 %v481_v39 }
  0x58   :  { %442 = vmatprep.subr.bf16.mxu1 %v586_v2 }
  0x5a   :  { %423 = vmatpush3.bf16.msra.mxu0 %v474_v16 }
  0x5b   :  { %443 = vmatpush3.bf16.msra.mxu1 %v482_v40 }
  0xbb   :  { %v74_v21 = vpop.permute.xlu0 %73  ;;  %v103_v22 = vpop.permute.xlu1 %102 }
  0xbc   :  { %v80_v23 = vmul.f32 %v367_v20, %v74_v21  ;;  %v109_v32 = vmul.f32 %v370_v26, %v103_v22 }
  0xbe   :  { %v88_v30 = vadd.f32 %v368_v24, %v80_v23 }
  0xc0   :  { %v92_v27 = vpop.permute.xlu0 %91  ;;  %v114_v29 = vpop.permute.xlu1 %113 }
  0xc1   :  { %v98_v31 = vmul.f32 %v369_v25, %v92_v27  ;;  %v120_v34 = vmul.f32 %v371_v28, %v114_v29 }
  0xc3   :  { %v99_v33 = vadd.f32 %v98_v31, %v88_v30 }
  0xc5   :  { %v110_v35 = vadd.f32 %v109_v32, %v99_v33 }
  0xc7   :  { %v121_v36 = vadd.f32 %v120_v34, %v110_v35 }
  0xc9   :  { %v122_v37 = vmax.f32 %v121_v36, 0.0 }
  0xcb   :  { %v123_v38 = vpack.c.bf16 %v122_v37, %v122_v37 }
  0xcd   :  { %425 = vmatmul.mubr.bf16.vlgmr.msra.gmra.mrb[0].mxu0 %v123_v38 }
 0x1a0   :  { %v229_v42 = vpop.f32.mrb[0].mxu0 }
 0x1a1   :  { %v230_v43 = vadd.f32 %v372_v41, %v229_v42  ;;  %v426_v44 = vpop.f32.mrb[1].mxu0 }
 0x1a2   :  { %v232_v45 = vpop.f32.mrb[2].mxu0 }
 0x1a3   :  { %v235_v46 = vmax.f32 %v230_v43, 0.0  ;;  %v427_v47 = vpop.f32.mrb[3].mxu0 }
 0x1a5   :  { %v236_v48 = vpack.c.bf16 %v235_v46, %v235_v46 }
 0x1a7   :  { %445 = vmatmul.mubr.bf16.vlgmr.msra.gmra.mrb[0].mxu1 %v236_v48 }
 0x27a   :  { %v342_v50 = vpop.f32.mrb[0].mxu1 }
 0x27b   :  { %v343_v51 = vadd.f32 %v381_v49, %v342_v50  ;;  %v446_v52 = vpop.f32.mrb[1].mxu1 }
 0x27c   :  { %v345_v53 = vpop.f32.mrb[2].mxu1 }
 0x27d   :  { %348 = vst [vmem:[#allocation8] sm:$0xff] %v343_v51  ;;  %v447_v54 = vpop.f32.mrb[3].mxu1 }
 0x27e   :  { %353 = vsyncadd [#allocation4], 96  ;;  %s590_s4 = smov [#allocation8]  }
 0x27f   :  { %s354_s29 = sshll.u32 %s590_s4, 4  ;;  %s355_s29 = int_to_ptr.vmem [resolvable:$true] %s354_s29 }
 0x280   :  { %s549_s30 = scalar_lea.vmem %s355_s29, 32  ;;  %s553_s8 = scalar_lea.vmem %s355_s29, 128 }
 0x281   :  { %p550_p10 = scmp.ne.s32.totalorder %s355_s29, %s549_s30  ;;  %p554_p11 = scmp.lt.s32.totalorder %s355_s29, %s355_s29 }
 0x282   :  { %p555_p12 = scmp.lt.s32.totalorder %s553_s8, %s549_s30 }
 0x284   :  { %p556_p13 = por %p555_p12, %p554_p11 }
 0x286   :  { %p557_p0 = pnand %p556_p13, %p550_p10 }
 0x288   :  { %560 = shalt.err (!%p557_p0)
}
 0x289   :  { %s561_s10 = scalar_lea.hbm %s737_s7, 32 }
 0x28a   :  { %p562_p1 = scmp.ne.s32.totalorder %s737_s7, %s561_s10  ;;  %p565_p2 = scmp.lt.u32.totalorder %s561_s10, %s737_s7 }
 0x28c   :  { %p567_p3 = pnand %p565_p2, %p562_p1 }
 0x28e   :  { %570 = shalt.err (!%p567_p3)
}
 0x28f   :  { %360 = dma.vmem_to_hbm [thread:$0]  %s355_s29, 32, %s737_s7, [#allocation4], %s581_s25, %s581_s25, %s582_s26  }
 0x290   :  { %575 = dma.done.wait [#allocation4], 128  }
 0x291   :  { %576 = vsyncadd [#allocation4], 4294967168 }
 0x292   :  { %364 = vsyncpa [#allocation3], 1 }
 0x293   :  { %365 = vsyncpa [#allocation6], 1 }
 0x294   :  { %366 = vsyncpa [#allocation4], 1 }

</bundles_post_ra>
